<compile_context>
chip_gen: v7x
topology: tpu7x:2x2x1
jax: 0.10.0
libtpu: 0.0.40
codegen_flags: <defaults>
</compile_context>

<pallas_src>
import functools

import jax
import jax.numpy as jnp
from jax import lax
from jax.experimental import pallas as pl
from jax.experimental.pallas import tpu as pltpu

_EPS = 1e-8  # torch.cosine_similarity default eps


def _id_diversity_kernel(x_ref, div_ref, *, feed_bf16):
    x = x_ref[...].astype(jnp.float32)                       # [N, D], f32 math
    n = x.shape[0]

    # Row inverse norms: rsqrt on the EUP. sqrt is monotone, so
    # rsqrt(max(sq, eps^2)) == 1 / max(||x||, eps), matching torch semantics.
    sq = jnp.sum(x * x, axis=1, keepdims=True)               # [N, 1]
    inv_norm = lax.rsqrt(jnp.maximum(sq, _EPS * _EPS))        # [N, 1]

    # Pre-normalize rows (VPU), then a single MXU dot_general in the
    # transposed-RHS form (contract D of both operands) yields the cosine
    # matrix directly -- no explicit transpose, no K=1 outer product, no
    # extra [N,N] multiply.
    xn = x * inv_norm                                         # [N, D] f32
    if feed_bf16:
        xn = xn.astype(jnp.bfloat16)                          # fewer MXU passes
    else:
        xn = xn.astype(x_ref.dtype)                           # feed input dtype
    cos = lax.dot_general(
        xn, xn,
        dimension_numbers=(((1,), (1,)), ((), ())),
        preferred_element_type=jnp.float32)                   # [N, N] f32

    # Zero the diagonal and clamp negatives with one fused select, then mean
    # over all N*N entries.
    rows = lax.broadcasted_iota(jnp.int32, (n, n), 0)
    cols = lax.broadcasted_iota(jnp.int32, (n, n), 1)
    contrib = jnp.where(rows != cols, jnp.maximum(cos, 0.0), 0.0)

    div_ref[0] = jnp.sum(contrib) * (1.0 / (n * n))           # scalar -> SMEM


def id_diversity_loss(id_vecs, diversity_coef=1.0, *, feed_bf16=False):
    """JAX/Pallas equivalent of IDDiversityLoss.forward.

    Args:
      id_vecs: [N, D] float array (f32 or bf16).
      diversity_coef: scalar coefficient.
      feed_bf16: if True, feed the MXU with bf16-normalized rows (faster on
        v6e/v7x; expect ~1e-3 relative error vs. an f32 reference).

    Returns:
      (total_loss, {'diversity_loss': l_id_div}) as scalar float32 values.
    """
    kernel = functools.partial(_id_diversity_kernel, feed_bf16=feed_bf16)
    div = pl.pallas_call(
        kernel,
        out_shape=jax.ShapeDtypeStruct((1,), jnp.float32),
        in_specs=[pl.BlockSpec(memory_space=pltpu.MemorySpace.VMEM)],
        out_specs=pl.BlockSpec(memory_space=pltpu.MemorySpace.SMEM),
    )(id_vecs)
    l_id_div = div[0]
    total_loss = jnp.float32(diversity_coef) * l_id_div       # coef folded here
    return total_loss, {"diversity_loss": l_id_div}


def _reference(id_vecs, diversity_coef=1.0):
    """Pure-JAX reference mirroring the PyTorch module."""
    x = id_vecs.astype(jnp.float32)
    n = x.shape[0]
    norm = jnp.maximum(jnp.linalg.norm(x, axis=1, keepdims=True), _EPS)
    xn = x / norm
    cos = xn @ xn.T
    coe = jnp.ones((n, n), jnp.float32) - jnp.eye(n, dtype=jnp.float32)
    id_sim = coe * cos
    l_id_div = jnp.mean(jnp.where(id_sim < 0, 0.0, id_sim))
    return diversity_coef * l_id_div, l_id_div


if __name__ == "__main__":
    key = jax.random.PRNGKey(0)
    N, D = 8, 32  # small shapes: 8 identity vectors of dim 32
    id_vecs = jax.random.normal(key, (N, D), dtype=jnp.float32)

    total_loss, aux = id_diversity_loss(id_vecs, diversity_coef=1.0)
    total_loss = jax.block_until_ready(total_loss)
    div_loss = jax.block_until_ready(aux["diversity_loss"])

    ref_total, ref_div = _reference(id_vecs, 1.0)
    assert jnp.allclose(total_loss, ref_total, atol=1e-5, rtol=1e-5), (
        total_loss, ref_total)
    assert jnp.allclose(div_loss, ref_div, atol=1e-5, rtol=1e-5), (
        div_loss, ref_div)

    # Optional bf16 MXU-feed path (looser tolerance, per review note).
    total_bf16, aux_bf16 = id_diversity_loss(id_vecs, 1.0, feed_bf16=True)
    total_bf16 = jax.block_until_ready(total_bf16)
    assert jnp.allclose(total_bf16, ref_total, atol=1e-2, rtol=1e-2), (
        total_bf16, ref_total)

    print("KERNEL_OK")
</pallas_src>

<mosaic_0001>
module attributes {stable_mosaic.version = 11 : i64} {
  func.func @_id_diversity_kernel(%arg0: memref<8x32xf32, #tpu.memory_space<vmem>>, %arg1: memref<1xf32, #tpu.memory_space<smem>>) attributes {dimension_semantics = [], scalar_prefetch = 0 : i64, scratch_operands = 0 : i64, tpu.core_type = #tpu.core_type<tc>} {
    %c0 = arith.constant 0 : index
    %c0_0 = arith.constant 0 : index
    %0 = vector.load %arg0[%c0, %c0_0] : memref<8x32xf32, #tpu.memory_space<vmem>>, vector<8x32xf32>
    %1 = arith.mulf %0, %0 : vector<8x32xf32>
    %cst = arith.constant dense<0.000000e+00> : vector<8xf32>
    %2 = vector.multi_reduction <add>, %1, %cst [1] : vector<8x32xf32> to vector<8xf32>
    %3 = vector.shape_cast %2 : vector<8xf32> to vector<8x1xf32>
    %cst_1 = arith.constant 1.000000e-16 : f32
    %4 = vector.broadcast %cst_1 : f32 to vector<8x1xf32>
    %5 = arith.maximumf %3, %4 : vector<8x1xf32>
    %6 = math.rsqrt %5 : vector<8x1xf32>
    %7 = vector.broadcast %6 : vector<8x1xf32> to vector<8x32xf32>
    %8 = arith.mulf %0, %7 : vector<8x32xf32>
    %cst_2 = arith.constant dense<0.000000e+00> : vector<8x8xf32>
    %9 = tpu.matmul %8, %8, %cst_2 {dimension_numbers = #tpu.dot_dimension_numbers<[1], [1], [0], [0], [0, 0, 1, 0], [], []>} : vector<8x32xf32>, vector<8x32xf32>, vector<8x8xf32> -> vector<8x8xf32>
    %10 = tpu.iota {dimensions = array<i32: 0>} : vector<8x8xi32>
    %11 = tpu.iota {dimensions = array<i32: 1>} : vector<8x8xi32>
    %12 = arith.cmpi ne, %10, %11 : vector<8x8xi32>
    %cst_3 = arith.constant 0.000000e+00 : f32
    %13 = vector.broadcast %cst_3 : f32 to vector<8x8xf32>
    %14 = arith.maximumf %9, %13 : vector<8x8xf32>
    %cst_4 = arith.constant 0.000000e+00 : f32
    %15 = vector.broadcast %cst_4 : f32 to vector<8x8xf32>
    %16 = arith.select %12, %14, %15 : vector<8x8xi1>, vector<8x8xf32>
    %17 = vector.shape_cast %16 : vector<8x8xf32> to vector<1x8x8xf32>
    %cst_5 = arith.constant dense<0.000000e+00> : vector<1xf32>
    %18 = vector.multi_reduction <add>, %17, %cst_5 [1, 2] : vector<1x8x8xf32> to vector<1xf32>
    %19 = vector.shape_cast %18 : vector<1xf32> to vector<1x1x1xf32>
    %20 = vector.extract %19[0, 0, 0] : f32 from vector<1x1x1xf32>
    %cst_6 = arith.constant 1.562500e-02 : f32
    %21 = arith.mulf %20, %cst_6 : f32
    %c0_7 = arith.constant 0 : index
    %22 = memref.load %arg1[%c0_7] : memref<1xf32, #tpu.memory_space<smem>>
    memref.store %21, %arg1[%c0_7] : memref<1xf32, #tpu.memory_space<smem>>
    return
  }
}

</mosaic_0001>

<bundles_post_ra>
// kernel: tpu_custom_call.1
= control target key start
LH: loop header
LB: loop body
LE: loop exit
PB: predicated region body
PF: predicated region fallthrough
CT: control target
= control target key end

     0   :  { %6 = vsyncpa [#allocation3], 0  ;;  %s229_s0 = inlined_call_operand.hbm [shape: f32[8,32], index: 0, kind: input, shape index: {}]   ;;  %s230_s1 = inlined_call_operand.hbm [shape: f32[1], index: 1, kind: output, shape index: {}]  }
   0x1   :  { %7 = vsyncpa [#allocation4], 0  ;;  %s191_s6 = smov [#allocation2]   ;;  %s155_s10 = scalar_lea.hbm %s229_s0, 128 }
   0x2   :  { %s14_s7 = sshll.u32 %s191_s6, 4  ;;  %p156_p0 = scmp.ne.s32.totalorder %s229_s0, %s155_s10  ;;  %s15_s7 = int_to_ptr.vmem [resolvable:$true] %s14_s7 }
   0x3   :  { %p159_p1 = scmp.lt.u32.totalorder %s155_s10, %s229_s0 }
   0x5   :  { %p161_p2 = pnand %p159_p1, %p156_p0 }
   0x7   :  { %164 = shalt.err (!%p161_p2)
}
   0x8   :  { %s165_s15 = scalar_lea.vmem %s15_s7, 128  ;;  %p170_p4 = scmp.lt.s32.totalorder %s15_s7, %s15_s7 }
   0x9   :  { %p166_p3 = scmp.ne.s32.totalorder %s15_s7, %s165_s15  ;;  %p171_p5 = scmp.lt.s32.totalorder %s165_s15, %s165_s15 }
   0xb   :  { %p172_p6 = por %p171_p5, %p170_p4 }
   0xd   :  { %p173_p7 = pnand %p172_p6, %p166_p3 }
   0xf   :  { %176 = shalt.err (!%p173_p7)
}
  0x10   :  { %17 = dma.hbm_to_vmem [thread:$0]  %s229_s0, 128, %s15_s7, [#allocation3]  }
  0x11   :  { %187 = dma.done.wait [#allocation3], 128  }
  0x12   :  { %188 = vsyncadd [#allocation3], 4294967168  ;;  %v21_v0 = vld [vmem:[#allocation2] sm:$0xff]  ;;  %vm23_vm0 = vcmask 261120   ;;  %v192_v3 = vmov 0.0   ;;  %vm193_vm1 = vmmov 0   ;;  %v103_v8 = vlaneseq }
  0x13   :  { %v22_v1 = vmul.f32 %v21_v0, %v21_v0  ;;  %142 = vmatprep.subr.mxu0 %v192_v3  ;;  %144 = vmatprep.mubr.msk.f32.mxu0 %vm193_vm1, %v192_v3  ;;  %vm110_vm3 = vcmask 64512   ;;  %s177_s21 = scalar_lea.hbm %s230_s1, 16 }
  0x14   :  { %v104_v9 = vshrl.u32 %v103_v8, 7  ;;  %v106_v10 = vand.u32 127, %v103_v8  ;;  %p178_p8 = scmp.ne.s32.totalorder %s230_s1, %s177_s21  ;;  %p181_p9 = scmp.lt.u32.totalorder %s177_s21, %s230_s1 }
  0x15   :  { %v24_v2 = vsel %vm23_vm0, %v22_v1, 0.0 }
  0x16   :  { %25 = vadd.xlane.f32.xlu0 %v24_v2  ;;  %vm107_vm2 = vcmp.ne.s32.totalorder %v104_v9, %v106_v10  ;;  %p183_p10 = pnand %p181_p9, %p178_p8 }
  0xa3   :  { %v26_v4 = vpop.xlane.xlu0 %25 }
  0xa4   :  { %v27_v5 = vmax.f32 %v26_v4, 1e-16 }
  0xa6   :  { %153 = vrsqrt.f32 %v27_v5 }
  0xb0   :  { %v154_v6 = vpop.eup %153 }
  0xb1   :  { %v29_v7 = vmul.f32 %v154_v6, %v21_v0 }
  0xb3   :  { %143 = vmatpush3.xpose.msk.msra.mxu0 %vm23_vm0, %v29_v7 }
  0xb6   :  { %145 = vmatmul.mubr.msk.f32.vlgmr.msra.gmra.mrb[0].mxu0 %vm23_vm0, %v29_v7 }
 0x189   :  { %v99_v11 = vpop.f32.mrb[0].mxu0 }
 0x18a   :  { %v108_v12 = vmax.f32 %v99_v11, 0.0  ;;  %v146_v13 = vpop.f32.mrb[1].mxu0 }
 0x18c   :  { %v109_v14 = vsel %vm107_vm2, %v108_v12, 0.0 }
 0x18d   :  { %v111_v15 = vsel %vm110_vm3, %v109_v14, 0.0 }
 0x18e   :  { %112 = vadd.xlane.f32.xlu0 %v111_v15 }
 0x21b   :  { %v113_v16 = vpop.xlane.xlu0 %112 }
 0x21c   :  { %v114_v17 = vrot.slane %v113_v16, 4 }
 0x21e   :  { %v115_v18 = vadd.f32 %v114_v17, %v113_v16 }
 0x220   :  { %v116_v19 = vrot.slane %v115_v18, 2 }
 0x222   :  { %v117_v20 = vadd.f32 %v116_v19, %v115_v18 }
 0x224   :  { %v118_v21 = vrot.slane %v117_v20, 1 }
 0x226   :  { %v119_v22 = vadd.f32 %v118_v21, %v117_v20 }
 0x228   :  { %147 = vpush %v119_v22 }
 0x259   :  { %s148_s0 = spop %147 }
 0x25a   :  { %s121_s18 = smul.f32 0.015625, %s148_s0 }
 0x25c   :  { %123 = sst [smem:[#allocation5]] %s121_s18 }
 0x25d   :  { %186 = shalt.err (!%p183_p10)
}
 0x25e   :  { %s194_s26 = smov [#allocation5]  }
 0x25f   :  { %131 = dma.smem_to_hbm %s194_s26, 16, %s230_s1, [#allocation4]  }
 0x260   :  { %189 = dma.done.wait [#allocation4], 16  }
 0x261   :  { %190 = vsyncadd [#allocation4], 4294967280 }
 0x262   :  { %135 = sfence }
 0x263   :  { %136 = vsyncpa [#allocation3], 1 }
 0x264   :  { %137 = vsyncpa [#allocation4], 1 }

</bundles_post_ra>
